<compile_context>
chip_gen: v5e
topology: v5e:2x2
jax: 0.10.0
libtpu: 0.0.40
codegen_flags: <defaults>
</compile_context>

<pallas_src>
import math
from functools import partial

import numpy as np
import jax
import jax.numpy as jnp
from jax.experimental import pallas as pl
from jax.experimental.pallas import tpu as pltpu


# ----------------------------- Pallas kernel ------------------------------- #
def _cdae_kernel(s_valid, padded,
                 std_ref,                        # SMEM (1,1) f32
                 x_ref, eps_ref, ctx_ref,        # VMEM (1,TS,Din), (1,TS,Din), (1,1,Dctx)
                 wi_ref, bi_ref,                 # inp_encode
                 wc_ref, bc_ref,                 # ctx_encode
                 w1a_ref, w1b_ref, b1_ref,       # dae layer 1 (split along concat dim)
                 w2_ref, b2_ref,                 # dae layer 2
                 psum_ref):                      # out: (1,1,1,128) partial loss sum
    std = std_ref[0, 0]
    x = x_ref[0]                                 # (TS, Din)
    eps = eps_ref[0]                             # (TS, Din)
    x_bar = x + std * eps                        # add_gaussian_noise

    # --- input encode: K = Din (tiny) -> VPU broadcast-FMAs, skip the MXU ---
    din = x.shape[1]
    inp_pre = bi_ref[...]                        # (1, H), broadcasts up
    for k in range(din):
        inp_pre = inp_pre + x_bar[:, k:k + 1] * wi_ref[k:k + 1, :]
    inp = jnp.tanh(inp_pre)                      # (TS, H)

    # --- context encode + its W1 half: one row per tile (ctx is per-batch) ---
    ctx = ctx_ref[0]                             # (1, Dctx)
    dctx = ctx.shape[1]
    ctx_pre = bc_ref[...]                        # (1, H)
    for k in range(dctx):
        ctx_pre = ctx_pre + ctx[:, k:k + 1] * wc_ref[k:k + 1, :]
    ctx_enc = jnp.tanh(ctx_pre)                  # (1, H)
    # (8, H) broadcast keeps the matmul M-dim sublane-aligned; take row 0.
    ctx_h1 = jnp.dot(jnp.broadcast_to(ctx_enc, (8, ctx_enc.shape[1])),
                     w1b_ref[...],
                     preferred_element_type=jnp.float32)[0:1, :]   # (1, H)

    # --- dae layer 1: concat folded into inp @ W1a + ctx_enc @ W1b ---
    h1 = jnp.tanh(
        jnp.dot(inp, w1a_ref[...], preferred_element_type=jnp.float32)
        + ctx_h1 + b1_ref[...])                  # (TS, H)

    # --- dae layer 2 (no output nonlinearity) ---
    g = jnp.dot(h1, w2_ref[...], preferred_element_type=jnp.float32) + b2_ref[...]

    # --- partial sum of (std*g + eps)^2 over valid rows of this tile ---
    diff = std * g + eps
    sq = diff * diff
    if padded:  # static: only the padded-S case pays for the mask
        ts = x.shape[0]
        row = (jax.lax.broadcasted_iota(jnp.int32, sq.shape, 0)
               + pl.program_id(1) * ts)
        sq = jnp.where(row < s_valid, sq, 0.0)
    psum = jnp.sum(sq)
    psum_ref[...] = jnp.full(psum_ref.shape, psum, jnp.float32)


# ------------------------------ host wrapper ------------------------------- #
def _round_up(v, m):
    return ((v + m - 1) // m) * m


def conditional_dae_forward(x, context, params, std, noise_key, row_tile=512):
    """Mirrors ConditionalDAE.forward; returns (None, loss, eps)."""
    B, S, Din = x.shape
    Dctx = context.shape[-1]
    H = params["wi"].shape[1]

    eps = jax.random.normal(noise_key, (B, S, Din), jnp.float32)

    # Row tile over the sample axis: multiple of 8, capped, pad S if needed.
    TS = min(_round_up(row_tile, 8), _round_up(S, 8))
    num_s_tiles = -(-S // TS)
    S_pad = num_s_tiles * TS

    x_f = x.astype(jnp.float32)
    eps_f = eps
    if S_pad != S:
        pad = ((0, 0), (0, S_pad - S), (0, 0))
        x_f = jnp.pad(x_f, pad)
        eps_f = jnp.pad(eps_f, pad)
    ctx_f = context.astype(jnp.float32)
    std_arr = jnp.full((1, 1), std, jnp.float32)

    kernel = partial(_cdae_kernel, S, S_pad != S)

    def wspec(shape):   # weight/bias: full-extent block, resident across grid
        return pl.BlockSpec(shape, lambda b, s: (0,) * len(shape))

    grid_spec = pltpu.PrefetchScalarGridSpec(
        num_scalar_prefetch=0,
        grid=(B, num_s_tiles),
        in_specs=[
            pl.BlockSpec(memory_space=pltpu.MemorySpace.SMEM),     # std
            pl.BlockSpec((1, TS, Din), lambda b, s: (b, s, 0)),    # x
            pl.BlockSpec((1, TS, Din), lambda b, s: (b, s, 0)),    # eps
            pl.BlockSpec((1, 1, Dctx), lambda b, s: (b, 0, 0)),    # context (unexpanded)
            wspec((Din, H)), wspec((1, H)),                        # wi, bi
            wspec((Dctx, H)), wspec((1, H)),                       # wc, bc
            wspec((H, H)), wspec((H, H)), wspec((1, H)),           # w1a, w1b, b1
            wspec((H, Din)), wspec((1, Din)),                      # w2, b2
        ],
        out_specs=pl.BlockSpec((1, 1, 1, 128), lambda b, s: (b, s, 0, 0)),
    )

    partials = pl.pallas_call(
        kernel,
        grid_spec=grid_spec,
        out_shape=jax.ShapeDtypeStruct((B, num_s_tiles, 1, 128), jnp.float32),
        compiler_params=pltpu.CompilerParams(
            dimension_semantics=("parallel", "parallel")),
    )(std_arr, x_f, eps_f, ctx_f,
      params["wi"], params["bi"], params["wc"], params["bc"],
      params["w1a"], params["w1b"], params["b1"], params["w2"], params["b2"])

    # Finish the mean over the true (unpadded) element count.
    loss = jnp.sum(partials[:, :, 0, 0]) / (B * S * Din)
    return None, loss, eps


# ------------------------- parameter initialization ------------------------ #
def _init_linear(key, fan_in, fan_out):
    # Mimics torch.nn.Linear default init U(-1/sqrt(in), 1/sqrt(in)).
    kw, kb = jax.random.split(key)
    bound = 1.0 / math.sqrt(fan_in)
    w = jax.random.uniform(kw, (fan_in, fan_out), jnp.float32, -bound, bound)
    b = jax.random.uniform(kb, (1, fan_out), jnp.float32, -bound, bound)
    return w, b


def make_params(key, input_dim, context_dim, h_dim):
    ks = jax.random.split(key, 4)
    wi, bi = _init_linear(ks[0], input_dim, h_dim)     # inp_encode
    wc, bc = _init_linear(ks[1], context_dim, h_dim)   # ctx_encode
    w1, b1 = _init_linear(ks[2], 2 * h_dim, h_dim)     # dae.fc (concat input)
    w2, b2 = _init_linear(ks[3], h_dim, input_dim)     # dae.out
    return dict(wi=wi, bi=bi, wc=wc, bc=bc,
                w1a=w1[:h_dim], w1b=w1[h_dim:], b1=b1, w2=w2, b2=b2)


# ------------------------ host (numpy f64) reference ------------------------ #
def ref_loss_np(x, context, params, std, eps):
    x = np.asarray(x, np.float64)
    ctx = np.asarray(context, np.float64)
    eps = np.asarray(eps, np.float64)
    p = {k: np.asarray(v, np.float64) for k, v in params.items()}
    B, S, Din = x.shape
    x2 = x.reshape(B * S, Din)
    eps2 = eps.reshape(B * S, Din)
    ctx2 = np.broadcast_to(ctx, (B, S, ctx.shape[-1])).reshape(B * S, -1)
    x_bar = x2 + std * eps2
    inp = np.tanh(x_bar @ p["wi"] + p["bi"])
    ctxe = np.tanh(ctx2 @ p["wc"] + p["bc"])
    h1 = np.tanh(inp @ p["w1a"] + ctxe @ p["w1b"] + p["b1"])
    g = h1 @ p["w2"] + p["b2"]
    return float(np.mean((std * g + eps2) ** 2))


# ----------------------------------- main ----------------------------------- #
if __name__ == "__main__":
    INPUT_DIM, CONTEXT_DIM, H_DIM = 2, 2, 128    # module defaults
    STD = 0.01

    root = jax.random.PRNGKey(0)
    k_x, k_ctx, k_par, k_noise, k_x2, k_ctx2, k_noise2 = jax.random.split(root, 7)
    params = make_params(k_par, INPUT_DIM, CONTEXT_DIM, H_DIM)

    # Case 1: small default shapes (single row tile per batch).
    B, S = 2, 8
    x = jax.random.normal(k_x, (B, S, INPUT_DIM), jnp.float32)
    context = jax.random.normal(k_ctx, (B, 1, CONTEXT_DIM), jnp.float32)
    _, loss, eps = conditional_dae_forward(x, context, params, STD, k_noise)
    jax.block_until_ready(loss)
    np.testing.assert_allclose(float(loss), ref_loss_np(x, context, params, STD, eps),
                               rtol=1e-2, atol=1e-5)

    # Case 2: exercises multi-tile grid + padded-row masking in the reduction.
    B2, S2 = 3, 20
    x2 = jax.random.normal(k_x2, (B2, S2, INPUT_DIM), jnp.float32)
    context2 = jax.random.normal(k_ctx2, (B2, 1, CONTEXT_DIM), jnp.float32)
    _, loss2, eps2 = conditional_dae_forward(x2, context2, params, STD, k_noise2,
                                             row_tile=8)
    jax.block_until_ready(loss2)
    np.testing.assert_allclose(float(loss2), ref_loss_np(x2, context2, params, STD, eps2),
                               rtol=1e-2, atol=1e-5)

    print("KERNEL_OK")
</pallas_src>

<mosaic_0001>
module attributes {stable_mosaic.version = 11 : i64} {
  func.func @_cdae_kernel(%arg0: i32, %arg1: i32, %arg2: memref<1x1xf32, #tpu.memory_space<smem>>, %arg3: memref<1x8x2xf32, #tpu.memory_space<vmem>>, %arg4: memref<1x8x2xf32, #tpu.memory_space<vmem>>, %arg5: memref<1x1x2xf32, #tpu.memory_space<vmem>>, %arg6: memref<2x128xf32, #tpu.memory_space<vmem>>, %arg7: memref<1x128xf32, #tpu.memory_space<vmem>>, %arg8: memref<2x128xf32, #tpu.memory_space<vmem>>, %arg9: memref<1x128xf32, #tpu.memory_space<vmem>>, %arg10: memref<128x128xf32, #tpu.memory_space<vmem>>, %arg11: memref<128x128xf32, #tpu.memory_space<vmem>>, %arg12: memref<1x128xf32, #tpu.memory_space<vmem>>, %arg13: memref<128x2xf32, #tpu.memory_space<vmem>>, %arg14: memref<1x2xf32, #tpu.memory_space<vmem>>, %arg15: memref<1x1x1x128xf32, #tpu.memory_space<vmem>>) attributes {dimension_semantics = [#tpu.dimension_semantics<parallel>, #tpu.dimension_semantics<parallel>], iteration_bounds = array<i64: 2, 1>, scalar_prefetch = 0 : i64, scratch_operands = 0 : i64, tpu.core_type = #tpu.core_type<tc>, window_params = [{transform_indices = @transform_0, window_bounds = array<i64: 1, 1>}, {transform_indices = @transform_1, window_bounds = array<i64: 1, 8, 2>}, {transform_indices = @transform_2, window_bounds = array<i64: 1, 8, 2>}, {transform_indices = @transform_3, window_bounds = array<i64: 1, 1, 2>}, {pipeline_mode = #tpu.pipeline_mode<synchronous>, transform_indices = @transform_4, window_bounds = array<i64: 2, 128>}, {pipeline_mode = #tpu.pipeline_mode<synchronous>, transform_indices = @transform_5, window_bounds = array<i64: 1, 128>}, {pipeline_mode = #tpu.pipeline_mode<synchronous>, transform_indices = @transform_6, window_bounds = array<i64: 2, 128>}, {pipeline_mode = #tpu.pipeline_mode<synchronous>, transform_indices = @transform_7, window_bounds = array<i64: 1, 128>}, {pipeline_mode = #tpu.pipeline_mode<synchronous>, transform_indices = @transform_8, window_bounds = array<i64: 128, 128>}, {pipeline_mode = #tpu.pipeline_mode<synchronous>, transform_indices = @transform_9, window_bounds = array<i64: 128, 128>}, {pipeline_mode = #tpu.pipeline_mode<synchronous>, transform_indices = @transform_10, window_bounds = array<i64: 1, 128>}, {pipeline_mode = #tpu.pipeline_mode<synchronous>, transform_indices = @transform_11, window_bounds = array<i64: 128, 2>}, {pipeline_mode = #tpu.pipeline_mode<synchronous>, transform_indices = @transform_12, window_bounds = array<i64: 1, 2>}, {transform_indices = @transform_13, window_bounds = array<i64: 1, 1, 1, 128>}]} {
    %c0 = arith.constant 0 : index
    %c0_0 = arith.constant 0 : index
    %0 = memref.load %arg2[%c0, %c0_0] : memref<1x1xf32, #tpu.memory_space<smem>>
    %c0_1 = arith.constant 0 : index
    %c0_2 = arith.constant 0 : index
    %c0_3 = arith.constant 0 : index
    %1 = vector.load %arg3[%c0_1, %c0_2, %c0_3] : memref<1x8x2xf32, #tpu.memory_space<vmem>>, vector<1x8x2xf32>
    %2 = vector.shape_cast %1 : vector<1x8x2xf32> to vector<8x2xf32>
    %c0_4 = arith.constant 0 : index
    %c0_5 = arith.constant 0 : index
    %c0_6 = arith.constant 0 : index
    %3 = vector.load %arg4[%c0_4, %c0_5, %c0_6] : memref<1x8x2xf32, #tpu.memory_space<vmem>>, vector<1x8x2xf32>
    %4 = vector.shape_cast %3 : vector<1x8x2xf32> to vector<8x2xf32>
    %5 = vector.broadcast %0 : f32 to vector<8x2xf32>
    %6 = arith.mulf %5, %4 : vector<8x2xf32>
    %7 = arith.addf %2, %6 : vector<8x2xf32>
    %c0_7 = arith.constant 0 : index
    %c0_8 = arith.constant 0 : index
    %8 = vector.load %arg7[%c0_7, %c0_8] : memref<1x128xf32, #tpu.memory_space<vmem>>, vector<1x128xf32>
    %9 = vector.extract_strided_slice %7 {offsets = [0, 0], sizes = [8, 1], strides = [1, 1]} : vector<8x2xf32> to vector<8x1xf32>
    %c0_9 = arith.constant 0 : index
    %c0_10 = arith.constant 0 : index
    %10 = vector.load %arg6[%c0_9, %c0_10] : memref<2x128xf32, #tpu.memory_space<vmem>>, vector<1x128xf32>
    %11 = vector.broadcast %9 : vector<8x1xf32> to vector<8x128xf32>
    %12 = vector.broadcast %10 : vector<1x128xf32> to vector<8x128xf32>
    %13 = arith.mulf %11, %12 : vector<8x128xf32>
    %14 = vector.broadcast %8 : vector<1x128xf32> to vector<8x128xf32>
    %15 = arith.addf %14, %13 : vector<8x128xf32>
    %16 = vector.extract_strided_slice %7 {offsets = [0, 1], sizes = [8, 1], strides = [1, 1]} : vector<8x2xf32> to vector<8x1xf32>
    %c1 = arith.constant 1 : index
    %c0_11 = arith.constant 0 : index
    %17 = vector.load %arg6[%c1, %c0_11] : memref<2x128xf32, #tpu.memory_space<vmem>>, vector<1x128xf32>
    %18 = vector.broadcast %16 : vector<8x1xf32> to vector<8x128xf32>
    %19 = vector.broadcast %17 : vector<1x128xf32> to vector<8x128xf32>
    %20 = arith.mulf %18, %19 : vector<8x128xf32>
    %21 = arith.addf %15, %20 : vector<8x128xf32>
    %22 = math.tanh %21 : vector<8x128xf32>
    %c0_12 = arith.constant 0 : index
    %c0_13 = arith.constant 0 : index
    %c0_14 = arith.constant 0 : index
    %23 = vector.load %arg5[%c0_12, %c0_13, %c0_14] : memref<1x1x2xf32, #tpu.memory_space<vmem>>, vector<1x1x2xf32>
    %24 = vector.shape_cast %23 : vector<1x1x2xf32> to vector<1x2xf32>
    %c0_15 = arith.constant 0 : index
    %c0_16 = arith.constant 0 : index
    %25 = vector.load %arg9[%c0_15, %c0_16] : memref<1x128xf32, #tpu.memory_space<vmem>>, vector<1x128xf32>
    %26 = vector.extract_strided_slice %24 {offsets = [0, 0], sizes = [1, 1], strides = [1, 1]} : vector<1x2xf32> to vector<1x1xf32>
    %c0_17 = arith.constant 0 : index
    %c0_18 = arith.constant 0 : index
    %27 = vector.load %arg8[%c0_17, %c0_18] : memref<2x128xf32, #tpu.memory_space<vmem>>, vector<1x128xf32>
    %28 = vector.broadcast %26 : vector<1x1xf32> to vector<1x128xf32>
    %29 = arith.mulf %28, %27 : vector<1x128xf32>
    %30 = arith.addf %25, %29 : vector<1x128xf32>
    %31 = vector.extract_strided_slice %24 {offsets = [0, 1], sizes = [1, 1], strides = [1, 1]} : vector<1x2xf32> to vector<1x1xf32>
    %c1_19 = arith.constant 1 : index
    %c0_20 = arith.constant 0 : index
    %32 = vector.load %arg8[%c1_19, %c0_20] : memref<2x128xf32, #tpu.memory_space<vmem>>, vector<1x128xf32>
    %33 = vector.broadcast %31 : vector<1x1xf32> to vector<1x128xf32>
    %34 = arith.mulf %33, %32 : vector<1x128xf32>
    %35 = arith.addf %30, %34 : vector<1x128xf32>
    %36 = math.tanh %35 : vector<1x128xf32>
    %37 = vector.shape_cast %36 : vector<1x128xf32> to vector<1x128xf32>
    %38 = vector.broadcast %37 : vector<1x128xf32> to vector<8x128xf32>
    %c0_21 = arith.constant 0 : index
    %c0_22 = arith.constant 0 : index
    %39 = vector.load %arg11[%c0_21, %c0_22] : memref<128x128xf32, #tpu.memory_space<vmem>>, vector<128x128xf32>
    %cst = arith.constant dense<0.000000e+00> : vector<8x128xf32>
    %40 = tpu.matmul %38, %39, %cst {dimension_numbers = #tpu.dot_dimension_numbers<[1], [0], [0], [1], [0, 0, 1, 1], [], []>} : vector<8x128xf32>, vector<128x128xf32>, vector<8x128xf32> -> vector<8x128xf32>
    %41 = vector.extract_strided_slice %40 {offsets = [0, 0], sizes = [1, 128], strides = [1, 1]} : vector<8x128xf32> to vector<1x128xf32>
    %c0_23 = arith.constant 0 : index
    %c0_24 = arith.constant 0 : index
    %42 = vector.load %arg10[%c0_23, %c0_24] : memref<128x128xf32, #tpu.memory_space<vmem>>, vector<128x128xf32>
    %cst_25 = arith.constant dense<0.000000e+00> : vector<8x128xf32>
    %43 = tpu.matmul %22, %42, %cst_25 {dimension_numbers = #tpu.dot_dimension_numbers<[1], [0], [0], [1], [0, 0, 1, 1], [], []>} : vector<8x128xf32>, vector<128x128xf32>, vector<8x128xf32> -> vector<8x128xf32>
    %44 = vector.broadcast %41 : vector<1x128xf32> to vector<8x128xf32>
    %45 = arith.addf %43, %44 : vector<8x128xf32>
    %c0_26 = arith.constant 0 : index
    %c0_27 = arith.constant 0 : index
    %46 = vector.load %arg12[%c0_26, %c0_27] : memref<1x128xf32, #tpu.memory_space<vmem>>, vector<1x128xf32>
    %47 = vector.broadcast %46 : vector<1x128xf32> to vector<8x128xf32>
    %48 = arith.addf %45, %47 : vector<8x128xf32>
    %49 = math.tanh %48 : vector<8x128xf32>
    %c0_28 = arith.constant 0 : index
    %c0_29 = arith.constant 0 : index
    %50 = vector.load %arg13[%c0_28, %c0_29] : memref<128x2xf32, #tpu.memory_space<vmem>>, vector<128x2xf32>
    %cst_30 = arith.constant dense<0.000000e+00> : vector<8x2xf32>
    %51 = tpu.matmul %49, %50, %cst_30 {dimension_numbers = #tpu.dot_dimension_numbers<[1], [0], [0], [1], [0, 0, 1, 1], [], []>} : vector<8x128xf32>, vector<128x2xf32>, vector<8x2xf32> -> vector<8x2xf32>
    %c0_31 = arith.constant 0 : index
    %c0_32 = arith.constant 0 : index
    %52 = vector.load %arg14[%c0_31, %c0_32] : memref<1x2xf32, #tpu.memory_space<vmem>>, vector<1x2xf32>
    %53 = vector.broadcast %52 : vector<1x2xf32> to vector<8x2xf32>
    %54 = arith.addf %51, %53 : vector<8x2xf32>
    %55 = vector.broadcast %0 : f32 to vector<8x2xf32>
    %56 = arith.mulf %55, %54 : vector<8x2xf32>
    %57 = arith.addf %56, %4 : vector<8x2xf32>
    %58 = arith.mulf %57, %57 : vector<8x2xf32>
    %59 = vector.shape_cast %58 : vector<8x2xf32> to vector<1x8x2xf32>
    %cst_33 = arith.constant dense<0.000000e+00> : vector<1xf32>
    %60 = vector.multi_reduction <add>, %59, %cst_33 [1, 2] : vector<1x8x2xf32> to vector<1xf32>
    %61 = vector.shape_cast %60 : vector<1xf32> to vector<1x1x1xf32>
    %62 = vector.extract %61[0, 0, 0] : f32 from vector<1x1x1xf32>
    %63 = vector.broadcast %62 : f32 to vector<1x1x1x128xf32>
    %c0_34 = arith.constant 0 : index
    %c0_35 = arith.constant 0 : index
    %c0_36 = arith.constant 0 : index
    %c0_37 = arith.constant 0 : index
    %64 = vector.load %arg15[%c0_34, %c0_35, %c0_36, %c0_37] : memref<1x1x1x128xf32, #tpu.memory_space<vmem>>, vector<1x1x1x128xf32>
    tpu.vector_store %arg15[%c0_34, %c0_35, %c0_36, %c0_37], %63 {strides = array<i32>} : memref<1x1x1x128xf32, #tpu.memory_space<vmem>>, vector<1x1x1x128xf32>,
    return
  }
  func.func @transform_0(%arg0: i32, %arg1: i32) -> (i32, i32) {
    %c0_i32 = arith.constant 0 : i32
    %c0_i32_0 = arith.constant 0 : i32
    %c0_i32_1 = arith.constant 0 : i32
    return %c0_i32, %c0_i32_0 : i32, i32
  }
  func.func @transform_1(%arg0: i32, %arg1: i32) -> (i32, i32, i32) {
    %c0_i32 = arith.constant 0 : i32
    %c0_i32_0 = arith.constant 0 : i32
    return %arg0, %arg1, %c0_i32 : i32, i32, i32
  }
  func.func @transform_2(%arg0: i32, %arg1: i32) -> (i32, i32, i32) {
    %c0_i32 = arith.constant 0 : i32
    %c0_i32_0 = arith.constant 0 : i32
    return %arg0, %arg1, %c0_i32 : i32, i32, i32
  }
  func.func @transform_3(%arg0: i32, %arg1: i32) -> (i32, i32, i32) {
    %c0_i32 = arith.constant 0 : i32
    %c0_i32_0 = arith.constant 0 : i32
    %c0_i32_1 = arith.constant 0 : i32
    return %arg0, %c0_i32, %c0_i32_0 : i32, i32, i32
  }
  func.func @transform_4(%arg0: i32, %arg1: i32) -> (i32, i32) {
    %c0_i32 = arith.constant 0 : i32
    %c0_i32_0 = arith.constant 0 : i32
    %c0_i32_1 = arith.constant 0 : i32
    return %c0_i32, %c0_i32_0 : i32, i32
  }
  func.func @transform_5(%arg0: i32, %arg1: i32) -> (i32, i32) {
    %c0_i32 = arith.constant 0 : i32
    %c0_i32_0 = arith.constant 0 : i32
    %c0_i32_1 = arith.constant 0 : i32
    return %c0_i32, %c0_i32_0 : i32, i32
  }
  func.func @transform_6(%arg0: i32, %arg1: i32) -> (i32, i32) {
    %c0_i32 = arith.constant 0 : i32
    %c0_i32_0 = arith.constant 0 : i32
    %c0_i32_1 = arith.constant 0 : i32
    return %c0_i32, %c0_i32_0 : i32, i32
  }
  func.func @transform_7(%arg0: i32, %arg1: i32) -> (i32, i32) {
    %c0_i32 = arith.constant 0 : i32
    %c0_i32_0 = arith.constant 0 : i32
    %c0_i32_1 = arith.constant 0 : i32
    return %c0_i32, %c0_i32_0 : i32, i32
  }
  func.func @transform_8(%arg0: i32, %arg1: i32) -> (i32, i32) {
    %c0_i32 = arith.constant 0 : i32
    %c0_i32_0 = arith.constant 0 : i32
    %c0_i32_1 = arith.constant 0 : i32
    return %c0_i32, %c0_i32_0 : i32, i32
  }
  func.func @transform_9(%arg0: i32, %arg1: i32) -> (i32, i32) {
    %c0_i32 = arith.constant 0 : i32
    %c0_i32_0 = arith.constant 0 : i32
    %c0_i32_1 = arith.constant 0 : i32
    return %c0_i32, %c0_i32_0 : i32, i32
  }
  func.func @transform_10(%arg0: i32, %arg1: i32) -> (i32, i32) {
    %c0_i32 = arith.constant 0 : i32
    %c0_i32_0 = arith.constant 0 : i32
    %c0_i32_1 = arith.constant 0 : i32
    return %c0_i32, %c0_i32_0 : i32, i32
  }
  func.func @transform_11(%arg0: i32, %arg1: i32) -> (i32, i32) {
    %c0_i32 = arith.constant 0 : i32
    %c0_i32_0 = arith.constant 0 : i32
    %c0_i32_1 = arith.constant 0 : i32
    return %c0_i32, %c0_i32_0 : i32, i32
  }
  func.func @transform_12(%arg0: i32, %arg1: i32) -> (i32, i32) {
    %c0_i32 = arith.constant 0 : i32
    %c0_i32_0 = arith.constant 0 : i32
    %c0_i32_1 = arith.constant 0 : i32
    return %c0_i32, %c0_i32_0 : i32, i32
  }
  func.func @transform_13(%arg0: i32, %arg1: i32) -> (i32, i32, i32, i32) {
    %c0_i32 = arith.constant 0 : i32
    %c0_i32_0 = arith.constant 0 : i32
    %c0_i32_1 = arith.constant 0 : i32
    return %arg0, %arg1, %c0_i32, %c0_i32_0 : i32, i32, i32, i32
  }
}

</mosaic_0001>

<bundles_post_ra>
// kernel: tpu_custom_call.1
= control target key start
LH: loop header
LB: loop body
LE: loop exit
PB: predicated region body
PF: predicated region fallthrough
CT: control target
= control target key end

     0   :  { %s1350_s0 = inlined_call_operand.<no memory space> [shape: f32[1,1], index: 0, kind: input, shape index: {}]   ;;  %s1351_s1 = inlined_call_operand.vmem [shape: f32[2,8,2], index: 1, kind: input, shape index: {}]   ;;  %s1352_s2 = inlined_call_operand.vmem [shape: f32[2,8,2], index: 2, kind: input, shape index: {}]   ;;  %s1353_s3 = inlined_call_operand.vmem [shape: f32[2,1,2], index: 3, kind: input, shape index: {}]   ;;  %s1354_s4 = inlined_call_operand.vmem [shape: f32[2,128], index: 4, kind: input, shape index: {}]   ;;  %s1355_s5 = inlined_call_operand.vmem [shape: f32[1,128], index: 5, kind: input, shape index: {}]   ;;  %s1356_s6 = inlined_call_operand.vmem [shape: f32[2,128], index: 6, kind: input, shape index: {}]   ;;  %s1357_s7 = inlined_call_operand.vmem [shape: f32[1,128], index: 7, kind: input, shape index: {}]   ;;  %s1358_s8 = inlined_call_operand.vmem [shape: f32[128,128], index: 8, kind: input, shape index: {}]   ;;  %s1359_s9 = inlined_call_operand.hbm [shape: f32[128,128], index: 9, kind: input, shape index: {}]   ;;  %s1360_s10 = inlined_call_operand.vmem [shape: f32[1,128], index: 10, kind: input, shape index: {}]   ;;  %s1361_s11 = inlined_call_operand.vmem [shape: f32[128,2], index: 11, kind: input, shape index: {}]   ;;  %s1362_s12 = inlined_call_operand.vmem [shape: f32[1,2], index: 12, kind: input, shape index: {}]   ;;  %s1363_s13 = inlined_call_operand.hbm [shape: f32[2,1,1,128], index: 13, kind: output, shape index: {}]  }
   0x1   :  { %1366 = sst [smem:[#allocation12_spill]] %s1351_s1 }
   0x2   :  { %1367 = sst [smem:[#allocation13_spill]] %s1359_s9 }
   0x3   :  { %18 = sst [smem:[#allocation2]] %s1350_s0 }
   0x4   :  { %19 = vsyncpa [#allocation4], 0 }
   0x5   :  { %20 = vsyncpa [#allocation5], 0 }
   0x6   :  { %22 = vsyncpa [#allocation5 + $0x1], 0  ;;  %s1113_s27 = smov 0   ;;  %s1115_s28 = smov 0  }
   0x7   :  { %s1117_s29 = smov 0   ;;  %s1119_s30 = smov 0  }
   0x8   :  { %s1121_s14 = smov 0   ;;  %s1123_s15 = smov 0  }
   0x9 LB: > { %1368 = sst [smem:[#allocation9_spill]] %s1029_s14  ;;  %s823_s0 = sadd.s32 4294967295, %s1033_s15   ;;  %s1033_s15 = sphi %s1123_s15, %s28_s15   ;;  %s1029_s14 = sphi %s1121_s14, %s1377_s14   ;;  %s1025_s30 = sphi %s1119_s30, %s1376_s30   ;;  %s1021_s29 = sphi %s1117_s29, %s1380_s29   ;;  %s1017_s28 = sphi %s1115_s28, %s1379_s28   ;;  %s1013_s27 = sphi %s1113_s27, %s1378_s27  }
   0xa   : > { %s824_s16 = sadd.s32 4294967294, %s1033_s15   ;;  %s40_s17 = sadd.s32 1, %s1029_s14 }
   0xb   : > { %s341_s18 = sadd.s32 1, %s1021_s29  ;;  %p42_p0 = scmp.ge.s32.totalorder %s40_s17, 2 }
   0xc   : > { %p351_p1 = scmp.ne.s32.totalorder %s1021_s29, %s1017_s28  ;;  %p352_p2 = scmp.eq.s32.totalorder %s823_s0, 1 }
   0xd   : > { %p357_p3 = scmp.ne.s32.totalorder %s1017_s28, %s1013_s27  ;;  %s1382_s17 = smov (%p42_p0, %s40_s17), 0 }
   0xe   : > { %1369 = sst [smem:[#allocation10_spill]] %s1382_s17  ;;  %p1153_p4 = por %p352_p2, %p351_p1 }
   0xf   : > { %p358_p5 = scmp.eq.s32.totalorder %s824_s16, 1  ;;  %s336_s20 = ssub.s32 %s1029_s14, %s1382_s17 }
  0x10   : > { %p825_p6 = scmp.ge.s32.totalorder %s1033_s15, 1  ;;  %p339_p7 = scmp.eq.s32.totalorder %s336_s20, 0 }
  0x11   : > { %p1160_p8 = por %p358_p5, %p357_p3  ;;  %p365_p9 = scmp.lt.s32.totalorder %s1033_s15, 3 }
  0x12   : > { %s1166_s22 = scalar_select %p339_p7, %s1021_s29, %s341_s18  }
  0x13   : > { %p366_p10 = pnand %p825_p6, %p365_p9  ;;  %p850_p11 = scmp.eq.s32.totalorder %s823_s0, 0 }
  0x14   : > { %1372 = sst [smem:[#allocation11_spill]] %s1166_s22  ;;  %s1035_s26 = smov [#allocation3]  }
  0x15   : > { %s1373_s9 = sld [smem:[#allocation13_spill]]  ;;  %p842_p12 = pneg %p366_p10 }
  0x16   : > { %s396_s16 = sshll.u32 %s1035_s26, 4  ;;  %s1036_s20 = smov 128   ;;  %s397_s16 = int_to_ptr.vmem [resolvable:$true] %s396_s16 }
  0x17   : > { %p843_p13 = pnand %p850_p11, %p842_p12  ;;  %s1037_s17 = smov 8  }
  0x18   : > { %447 = sbr.rel (%p366_p10) target bundleno = 637 (0x27d), region = 72 }
  0x1b   : > { %s394_s25 = sshll.u32 %s1373_s9, 4  ;;  %s395_s25 = int_to_ptr.hbm [resolvable:$true] %s394_s25 }
  0x1c   : > { %845 = dma.hbm_to_vmem [thread:$0]  (!%p843_p13), %s395_s25, 2048, %s397_s16, [#allocation4], %s1036_s20, %s1036_s20, %s1037_s17  }
  0x1d   : > { %1004 = dma.done.wait (%p850_p11), [#allocation4], 2048  }
  0x1e   : > { %1006 = vsyncadd (%p850_p11), [#allocation4], 4294965248  ;;  %p503_p0 = scmp.lt.s32.totalorder %s1025_s30, 1  ;;  %v1038_v0 = vmov 0   ;;  %s1172_s0 = sld [smem:[#allocation2]]  ;;  %v586_v6 = vld [vmem:[#allocation3 + $0x78] sm:$0xff] }
  0x1f   : > { %906 = vset.pattern.permute.xlu0 %v1038_v0  ;;  %908 = vset.pattern.permute.xlu1 %v1038_v0  ;;  %s1374_s1 = sld [smem:[#allocation12_spill]]  ;;  %v622_v7 = vld [vmem:[%s1358_s8 + $0x78] sm:$0xff]  ;;  %v585_v8 = vld [vmem:[#allocation3 + $0x70] sm:$0xff]  ;;  %v584_v11 = vld [vmem:[#allocation3 + $0x68] sm:$0xff]  ;;  %v1039_v15 = vmov 1   ;;  %vm693_vm0 = vcmask 15360  }
  0x20   : > { %s504_s18 = scalar_select %p503_p0, %s1025_s30, 1  ;;  %587 = vmatpush.msra.mxu0 %v586_v6  ;;  %624 = vmatpush.msra.mxu1 %v622_v7  ;;  %v621_v9 = vld [vmem:[%s1358_s8 + $0x70] sm:$0xff]  ;;  %v620_v12 = vld [vmem:[%s1358_s8 + $0x68] sm:$0xff]  ;;  %v583_v13 = vld [vmem:[#allocation3 + $0x60] sm:$0xff] }
  0x21   : > { %v619_v14 = vld [vmem:[%s1358_s8 + $0x60] sm:$0xff]  ;;  %v582_v16 = vld [vmem:[#allocation3 + $0x58] sm:$0xff]  ;;  %v581_v18 = vld [vmem:[#allocation3 + $0x50] sm:$0xff]  ;;  %s501_s14 = sand.u32 1, %s1017_s28  }
  0x22   : > { %s519_s26 = scalar_lea.vmem %s1353_s3, %s504_s18  ;;  %s830_s9 = sshll.u32 %s504_s18, 3  ;;  %588 = vmatpush.msra.mxu0 %v585_v8  ;;  %625 = vmatpush.msra.mxu1 %v621_v9  ;;  %v618_v17 = vld [vmem:[%s1358_s8 + $0x58] sm:$0xff]  ;;  %v617_v19 = vld [vmem:[%s1358_s8 + $0x50] sm:$0xff]  ;;  %v580_v20 = vld [vmem:[#allocation3 + $0x48] sm:$0xff] }
  0x23   : > { %s516_s22 = scalar_lea.vmem %s1352_s2, %s830_s9  ;;  %v548_v1 = vld [vmem:[%s519_s26] sm:$0x1]  ;;  %v616_v21 = vld [vmem:[%s1358_s8 + $0x48] sm:$0xff]  ;;  %v578_v24 = vld [vmem:[#allocation3 + $0x38] sm:$0xff]  ;;  %s502_s26 = scalar_lea.vmem [#allocation6], %s501_s14 }
  0x24   : > { %v1184_v3 = vld [vmem:[%s516_s22] sm:$0xff]  ;;  %v523_v4 = vstv %s1172_s0  ;;  %553 = vperm.xlu0 %906, %v548_v1   ;;  %589 = vmatpush.msra.mxu0 %v584_v11  ;;  %v614_v25 = vld [vmem:[%s1358_s8 + $0x38] sm:$0xff]  ;;  %v577_v26 = vld [vmem:[#allocation3 + $0x30] sm:$0xff]  ;;  %s716_s22 = scalar_lea.hbm %s1363_s13, %s1025_s30  ;;  %s718_s17 = sshll.u32 %s502_s26, 4  ;;  %s719_s17 = int_to_ptr.vmem [resolvable:$true] %s718_s17 }
  0x25   : > { %s509_s16 = scalar_lea.vmem %s1374_s1, %s830_s9  ;;  %v524_v5 = vmul.f32 %v523_v4, %v1184_v3  ;;  %626 = vmatpush.msra.mxu1 %v620_v12  ;;  %v579_v22 = vld [vmem:[#allocation3 + $0x40] sm:$0xff]  ;;  %v613_v27 = vld [vmem:[%s1358_s8 + $0x30] sm:$0xff]  ;;  %v576_v28 = vld [vmem:[#allocation3 + $0x28] sm:$0xff]  ;;  %s720_s25 = sshll.u32 %s716_s22, 4  ;;  %s721_s25 = int_to_ptr.hbm [resolvable:$true] %s720_s25 }
  0x26   : > { %v521_v2 = vld [vmem:[%s509_s16] sm:$0xff]  ;;  %590 = vmatpush.msra.mxu0 %v583_v13  ;;  %v612_v29 = vld [vmem:[%s1358_s8 + $0x28] sm:$0xff]  ;;  %v574_v32 = vld [vmem:[#allocation3 + $0x18] sm:$0xff]  ;;  %s707_s20 = scalar_lea.sflag [#allocation5], %s501_s14  ;;  %s965_s23 = sshra.s32 %s721_s25, 4  ;;  %s966_s23 = int_to_ptr.hbm [resolvable:$true] %s965_s23 }
  0x27   : > { %v525_v10 = vadd.f32 %v524_v5, %v521_v2  ;;  %627 = vmatpush.msra.mxu1 %v619_v14  ;;  %v615_v23 = vld [vmem:[%s1358_s8 + $0x40] sm:$0xff]  ;;  %v610_v33 = vld [vmem:[%s1358_s8 + $0x18] sm:$0xff]  ;;  %v573_v34 = vld [vmem:[#allocation3 + $0x10] sm:$0xff]  ;;  %s967_s18 = scalar_lea.hbm %s966_s23, 1  ;;  %s971_s30 = scalar_lea.hbm %s1363_s13, 2 }
  0x28   : > { %591 = vmatpush.msra.mxu0 %v582_v16  ;;  %v575_v30 = vld [vmem:[#allocation3 + $0x20] sm:$0xff]  ;;  %v609_v35 = vld [vmem:[%s1358_s8 + $0x10] sm:$0xff]  ;;  %v572_v36 = vld [vmem:[#allocation3 + $0x8] sm:$0xff]  ;;  %p968_p1 = scmp.ne.s32.totalorder %s966_s23, %s967_s18  ;;  %p972_p5 = scmp.lt.s32.totalorder %s966_s23, %s1363_s13 }
  0x29   : > { %530 = vperm.xlu1 %908, %v525_v10   ;;  %628 = vmatpush.msra.mxu1 %v618_v17  ;;  %v611_v31 = vld [vmem:[%s1358_s8 + $0x20] sm:$0xff]  ;;  %v608_v37 = vld [vmem:[%s1358_s8 + $0x8] sm:$0xff]  ;;  %v665_v40 = vld [vmem:[%s1361_s11 + $0x78] sm:$0xff]  ;;  %p973_p6 = scmp.lt.s32.totalorder %s971_s30, %s967_s18 }
  0x2a   : > { %592 = vmatpush.msra.mxu0 %v581_v18  ;;  %v571_v38 = vld [vmem:[#allocation3] sm:$0xff]  ;;  %v664_v41 = vld [vmem:[%s1361_s11 + $0x70] sm:$0xff]  ;;  %670 = vmatpush.msra.mxu2 %v665_v40  ;;  %v663_v42 = vld [vmem:[%s1361_s11 + $0x68] sm:$0xff]  ;;  %p969_p2 = pnand %p968_p1, %p1153_p4 }
  0x2b   : > { %629 = vmatpush.msra.mxu1 %v617_v19  ;;  %v607_v39 = vld [vmem:[%s1358_s8] sm:$0xff]  ;;  %v661_v44 = vld [vmem:[%s1361_s11 + $0x58] sm:$0xff]  ;;  %v660_v46 = vld [vmem:[%s1361_s11 + $0x50] sm:$0xff]  ;;  %p974_p7 = por %p973_p6, %p972_p5 }
  0x2c   : > { %907 = vset.pattern.permute.xlu0 %v1039_v15  ;;  %593 = vmatpush.msra.mxu0 %v580_v20  ;;  %v662_v43 = vld [vmem:[%s1361_s11 + $0x60] sm:$0xff]  ;;  %v659_v47 = vld [vmem:[%s1361_s11 + $0x48] sm:$0xff]  ;;  %v657_v53 = vld [vmem:[%s1361_s11 + $0x38] sm:$0xff]  ;;  %p970_p3 = pneg %p969_p2 }
  0x2d   : > { %561 = vperm.xlu0 %907, %v548_v1   ;;  %630 = vmatpush.msra.mxu1 %v616_v21  ;;  %v550_v50 = vld [vmem:[%s1356_s6] sm:$0x1]  ;;  %v559_v56 = vld [vmem:[%s1356_s6 + $0x1] sm:$0x1]  ;;  %v655_v11 = vld [vmem:[%s1361_s11 + $0x28] sm:$0xff] }
  0x2e   : > { %594 = vmatpush.msra.mxu0 %v579_v22  ;;  %671 = vmatpush.msra.mxu2 %v664_v41  ;;  %v658_v51 = vld [vmem:[%s1361_s11 + $0x40] sm:$0xff]  ;;  %v653_v13 = vld [vmem:[%s1361_s11 + $0x18] sm:$0xff]  ;;  %v652_v14 = vld [vmem:[%s1361_s11 + $0x10] sm:$0xff]  ;;  %p975_p9 = pnand %p974_p7, %p970_p3 }
  0x2f   : > { %631 = vmatpush.msra.mxu1 %v615_v23  ;;  %v910_v52 = vld [vmem:[%s1354_s4] ss:$0 sm:$0xff]  ;;  %v912_v61 = vld [vmem:[%s1354_s4 + $0x1] ss:$0 sm:$0xff] }
  0x30   : > { %595 = vmatpush.msra.mxu0 %v578_v24  ;;  %672 = vmatpush.msra.mxu2 %v663_v42  ;;  %v549_v55 = vld [vmem:[%s1357_s7] sm:$0x1] }
  0x31   : > { %909 = vset.pattern.permute.xlu1 %v1039_v15  ;;  %632 = vmatpush.msra.mxu1 %v614_v25  ;;  %v911_v58 = vld [vmem:[%s1355_s5] ss:$0 sm:$0xff]  ;;  %v651_v15 = vld [vmem:[%s1361_s11 + $0x8] sm:$0xff] }
  0x32   : > { %541 = vperm.xlu1 %909, %v525_v10   ;;  %596 = vmatpush.msra.mxu0 %v577_v26  ;;  %v656_v10 = vld [vmem:[%s1361_s11 + $0x30] sm:$0xff]  ;;  %v654_v12 = vld [vmem:[%s1361_s11 + $0x20] sm:$0xff] }
  0x33   : > { %633 = vmatpush.msra.mxu1 %v613_v27  ;;  %673 = vmatpush.msra.mxu2 %v662_v43  ;;  %v650_v16 = vld [vmem:[%s1361_s11] sm:$0xff] }
  0x34   : > { %597 = vmatpush.msra.mxu0 %v576_v28  ;;  %v913_v19 = vld [vmem:[%s1360_s10] ss:$0 sm:$0xff] }
  0x35   : > { %634 = vmatpush.msra.mxu1 %v612_v29  ;;  %674 = vmatpush.msra.mxu2 %v661_v44  ;;  %v914_v24 = vld [vmem:[%s1362_s12] ss:$0 sm:$0xff] }
  0x36   : > { %598 = vmatpush.msra.mxu0 %v575_v30 }
  0x37   : > { %635 = vmatpush.msra.mxu1 %v611_v31  ;;  %675 = vmatpush.msra.mxu2 %v660_v46 }
  0x38   : > { %599 = vmatpush.msra.mxu0 %v574_v32 }
  0x39   : > { %636 = vmatpush.msra.mxu1 %v610_v33  ;;  %676 = vmatpush.msra.mxu2 %v659_v47 }
  0x3a   : > { %600 = vmatpush.msra.mxu0 %v573_v34 }
  0x3b   : > { %637 = vmatpush.msra.mxu1 %v609_v35  ;;  %677 = vmatpush.msra.mxu2 %v658_v51 }
  0x3c   : > { %601 = vmatpush.msra.mxu0 %v572_v36 }
  0x3d   : > { %638 = vmatpush.msra.mxu1 %v608_v37  ;;  %678 = vmatpush.msra.mxu2 %v657_v53 }
  0x3e   : > { %602 = vmatpush.msra.mxu0 %v571_v38 }
  0x3f   : > { %639 = vmatpush.msra.mxu1 %v607_v39  ;;  %679 = vmatpush.msra.mxu2 %v656_v10 }
  0x41   : > { %680 = vmatpush.msra.mxu2 %v655_v11 }
  0x43   : > { %681 = vmatpush.msra.mxu2 %v654_v12 }
  0x45   : > { %682 = vmatpush.msra.mxu2 %v653_v13 }
  0x47   : > { %683 = vmatpush.msra.mxu2 %v652_v14 }
  0x49   : > { %684 = vmatpush.msra.mxu2 %v651_v15 }
  0x4b   : > { %685 = vmatpush.msra.mxu2 %v650_v16 }
  0x96   : > { %v554_v45 = vpop.permute.xlu0 %553 }
  0x97   : > { %v556_v48 = vperm.slane %v554_v45, 0 }
  0x99   : > { %v557_v54 = vmul.f32 %v556_v48, %v550_v50 }
  0x9b   : > { %v531_v49 = vpop.permute.xlu1 %530  ;;  %v558_v62 = vadd.f32 %v557_v54, %v549_v55 }
  0x9c   : > { %v534_v59 = vmul.f32 %v910_v52, %v531_v49 }
  0x9e   : > { %v538_v1 = vadd.f32 %v911_v58, %v534_v59 }
  0x9f   : > { %v562_v57 = vpop.permute.xlu0 %561 }
  0xa0   : > { %v564_v60 = vperm.slane %v562_v57, 0 }
  0xa2   : > { %v565_v63 = vmul.f32 %v564_v60, %v559_v56 }
  0xa4   : > { %v542_v0 = vpop.permute.xlu1 %541  ;;  %v566_v5 = vadd.f32 %v565_v63, %v558_v62 }
  0xa5   : > { %v545_v2 = vmul.f32 %v912_v61, %v542_v0 }
  0xa6   : > { %915 = vtanh.f32 %v566_v5 }
  0xa7   : > { %v546_v6 = vadd.f32 %v545_v2, %v538_v1 }
  0xa9   : > { %917 = vtanh.f32 %v546_v6 }
  0xac   : > { %v916_v7 = vpop.eup %915 }
  0xad   : > { %v569_v8 = vperm.slane %v916_v7, 0 }
  0xaf   : > { %v918_v9 = vpop.eup %917  ;;  %603 = vmatmul.f32.vlgmr.msra.gmra.mxu0 %v569_v8 }
  0xb0   : > { %640 = vmatmul.f32.vlgmr.msra.gmra.mxu1 %v918_v9 }
 0x12c   : > { %v604_v17 = vpop.f32.mrf.mxu0 }
 0x12d   : > { %v623_v18 = vperm.slane %v604_v17, 0  ;;  %v641_v20 = vpop.f32.mrf.mxu1 }
 0x12f   : > { %v642_v21 = vadd.f32 %v641_v20, %v623_v18 }
 0x131   : > { %v648_v22 = vadd.f32 %v913_v19, %v642_v21 }
 0x133   : > { %919 = vtanh.f32 %v648_v22 }
 0x139   : > { %v920_v23 = vpop.eup %919 }
 0x13a   : > { %686 = vmatmul.f32.vlgmr.msra.gmra.mxu2 %v920_v23 }
 0x1bd   : > { %v687_v25 = vpop.f32.mrf.mxu2 }
 0x1be   : > { %v688_v26 = vadd.f32 %v914_v24, %v687_v25 }
 0x1c0   : > { %v690_v27 = vmul.f32 %v688_v26, %v523_v4 }
 0x1c2   : > { %v691_v28 = vadd.f32 %v690_v27, %v1184_v3 }
 0x1c4   : > { %v692_v29 = vmul.f32 %v691_v28, %v691_v28 }
 0x1c6   : > { %v694_v30 = vsel %vm693_vm0, %v692_v29, 0.0 }
 0x1c7   : > { %695 = vadd.xlane.f32.xlu2 %v694_v30 }
 0x23a   : > { %v696_v31 = vpop.xlane.xlu2 %695 }
 0x23b   : > { %v697_v32 = vrot.slane %v696_v31, 4 }
 0x23d   : > { %v698_v33 = vadd.f32 %v697_v32, %v696_v31 }
 0x23f   : > { %v699_v34 = vrot.slane %v698_v33, 2 }
 0x241   : > { %v700_v35 = vadd.f32 %v699_v34, %v698_v33 }
 0x243   : > { %v701_v36 = vrot.slane %v700_v35, 1 }
 0x245   : > { %v702_v37 = vadd.f32 %v701_v36, %v700_v35 }
 0x247   : > { %834 = vpush %v702_v37 }
 0x278   : > { %s835_s16 = spop %834 }
 0x279   : > { %v704_v3 = vstv %s835_s16 }
 0x27a   : > { %705 = vst [vmem:[%s502_s26] sm:$0x1] %v704_v3 }
 0x27b   : > { %978 = shalt.err (!%p975_p9)
}
 0x27c   : > { %840 = dma.vmem_to_hbm [thread:$0]  (%p1153_p4), %s719_s17, 16, %s721_s25, %s707_s20  }
 0x27d PF: > { %p852_p10 = scmp.ge.s32.totalorder %s1033_s15, 2  ;;  %s732_s14 = sand.u32 1, %s1013_s27  }
 0x27e   : > { %s733_s1 = scalar_lea.sflag [#allocation5], %s732_s14 }
 0x27f   : > { %p847_p11 = pnand %p852_p10, %p1160_p8 }
 0x281   : > { %p848_p12 = pneg %p847_p11 }
 0x283   : > { %1008 = dma.done.wait (%p848_p12), %s733_s1, 16  }
 0x284   : > { %1010 = vsyncadd (%p848_p12), %s733_s1, 4294967280  ;;  %s28_s15 = sadd.s32 1, %s1033_s15   ;;  %s1375_s22 = sld [smem:[#allocation11_spill]] }
 0x285   : > { %p25_p13 = scmp.ge.s32.totalorder %s28_s15, 4   ;;  %s1376_s30 = sld [smem:[#allocation9_spill]] }
 0x286   : > { %s1377_s14 = sld [smem:[#allocation10_spill]]  ;;  %s1378_s27 = smov %s1017_s28 }
 0x287   : > { %s1379_s28 = smov %s1021_s29  ;;  %27 = sbr.rel (!%p25_p13) target bundleno = 9 (0x9), region = 118 }
 0x28a   : > { %s1380_s29 = smov %s1375_s22 }
 0x28c   :  { %738 = vsyncpa [#allocation4], 1 }
 0x28d   :  { %740 = vsyncpa [#allocation4 + $0x1], 1 }
 0x28e   :  { %741 = vsyncpa [#allocation5], 1 }
 0x28f   :  { %743 = vsyncpa [#allocation5 + $0x1], 1 }

</bundles_post_ra>
